<compile_context>
chip_gen: v7x
topology: tpu7x:2x2x1
jax: 0.10.0
libtpu: 0.0.40
codegen_flags: <defaults>
</compile_context>

<pallas_src>
import functools

import jax
import jax.numpy as jnp
from jax.experimental import pallas as pl
from jax.experimental.pallas import tpu as pltpu

NEG_BIG = -9000000000000000.0        # in-block mask constant (same as the PyTorch module)
OFF_BLOCK = 2.0 * NEG_BIG            # cross-batch / same-modality mask (strictly more negative)
COMPUTE_DTYPE = jnp.bfloat16         # MXU input dtype (f32 accumulation) on all TPU generations
LANES = 128                          # lane width of the packed slabs / weight matrices


def _round8(n):
    return (n + 7) // 8 * 8


# ----------------------------------------------------------------------------- kernel
def _dcga_kernel(data_ref, w_ref, out_ref, *, n_tot,
                 off_z, off_res, off_adj, off_cm, off_wn):
    cd = COMPUTE_DTYPE
    f32 = jnp.float32

    # Packed input rows: [[X, 0], [0, Y]] plus two bias-indicator lanes (cast once).
    z = data_ref[off_z:off_z + n_tot, :].astype(cd)                    # (Ntot, 128)
    wk, wks, wv = w_ref[0], w_ref[1], w_ref[2]                         # (128, 128) bf16 each

    # Fused Linear projections: batch & modality folded into the MXU M dimension;
    # every Linear bias folded into the weight slab via the indicator lanes;
    # gamma1/gamma2 pre-folded into the value weights.
    k1 = jnp.dot(z, wk, preferred_element_type=f32)                    # key stage 1
    pk = jnp.dot(k1.astype(cd), wks, preferred_element_type=f32)       # shared key stage
    pv = jnp.dot(z, wv, preferred_element_type=f32)                    # gamma-scaled values

    # All-node energy; only the cross-modal same-batch blocks survive the mask.
    pk_b = pk.astype(cd)
    e = jax.lax.dot_general(pk_b, pk_b, (((1,), (1,)), ((), ())),
                            preferred_element_type=f32)                # (Ntot, Ntot)

    # Block-diagonal node-axis Linear (vid_to_aud on video cols, aud_to_vid on
    # audio cols); its bias is folded into the combined mask `cm`.
    w_node = data_ref[off_wn:off_wn + n_tot, 0:n_tot].astype(cd)
    att = jnp.dot(e.astype(cd), w_node, preferred_element_type=f32)    # (Ntot, Ntot)

    # Masked softmax over the full node axis.  cm = bias*adj + mask, with
    # NEG_BIG inside the active cross-modal blocks where adj == 0 and OFF_BLOCK
    # everywhere outside the active blocks, so cross-batch entries always
    # underflow to exactly 0 and the per-batch softmax semantics are preserved.
    adj = data_ref[off_adj:off_adj + n_tot, 0:n_tot]
    cm = data_ref[off_cm:off_cm + n_tot, 0:n_tot]
    s_in = att * adj + cm
    m = jnp.max(s_in, axis=-1, keepdims=True)
    ex = jnp.exp(s_in - m)
    denom = jnp.sum(ex, axis=-1, keepdims=True)     # >= 1 (max subtracted) -> approx recip safe
    p = ex * pl.reciprocal(denom, approx=True)

    # Attention-weighted values + residual; ONE lane-dense (Ntot, 128) store.
    resid = data_ref[off_res:off_res + n_tot, :]
    out = jnp.dot(p.astype(cd), pv.astype(cd), preferred_element_type=f32) + resid
    out_ref[...] = out
    # TODO(synk): an in-kernel (Ntot, C) -> (Ntot*C/128, 128) relayout would make the
    # output fully packed; the (Ntot, 128) slab already gives unmasked full-lane stores.


# ----------------------------------------------------------------------------- packing
def pack_params(params, batch):
    """One-time packing of the 7 Linear weights/biases + gammas for a given batch size."""
    C, Cr = params["wk1"].shape
    Na = params["wa2v"].shape[0]
    Nv = params["wv2a"].shape[0]
    NvB, NaB = batch * Nv, batch * Na
    Ntot = NvB + NaB
    assert 2 * C + 2 <= LANES, "packing assumes 2*in_channels + 2 <= 128"
    assert Ntot <= LANES, "packing assumes batch*(vid_nodes + aud_nodes) <= 128"

    g1 = jnp.asarray(params["gamma1"], jnp.float32)
    g2 = jnp.asarray(params["gamma2"], jnp.float32)

    # Key stage 1: block-diag [wk1; wk2]; biases via indicator rows 2C / 2C+1,
    # which also write a 1.0 into column Cr so the shared-stage bias can be folded too.
    wk = jnp.zeros((LANES, LANES), jnp.float32)
    wk = wk.at[0:C, 0:Cr].set(params["wk1"])
    wk = wk.at[C:2 * C, 0:Cr].set(params["wk2"])
    wk = wk.at[2 * C, 0:Cr].set(params["bk1"].reshape(-1))
    wk = wk.at[2 * C + 1, 0:Cr].set(params["bk2"].reshape(-1))
    wk = wk.at[2 * C, Cr].set(1.0)
    wk = wk.at[2 * C + 1, Cr].set(1.0)

    # Shared key stage: wks + bks folded in via the propagated indicator column Cr.
    wks = jnp.zeros((LANES, LANES), jnp.float32)
    wks = wks.at[0:Cr, 0:Cr].set(params["wks"])
    wks = wks.at[Cr, 0:Cr].set(params["bks"].reshape(-1))

    # Value stage: block-diag [gamma2*wv1; gamma1*wv2]; scaled biases via indicator rows.
    wv = jnp.zeros((LANES, LANES), jnp.float32)
    wv = wv.at[0:C, 0:C].set(g2 * params["wv1"])
    wv = wv.at[C:2 * C, 0:C].set(g1 * params["wv2"])
    wv = wv.at[2 * C, 0:C].set(g2 * params["bv1"].reshape(-1))
    wv = wv.at[2 * C + 1, 0:C].set(g1 * params["bv2"].reshape(-1))

    w = jnp.stack([wk, wks, wv]).astype(COMPUTE_DTYPE)        # (3, 128, 128) bf16 slab

    # Node-axis Linear weights expanded to the global node axis (kept in the f32
    # data slab -> no sub-tile slicing of the packed bf16 weight slab in-kernel).
    w_node = jnp.zeros((Ntot, Ntot), jnp.float32)
    for b in range(batch):
        vs, as_ = b * Nv, NvB + b * Na
        w_node = w_node.at[vs:vs + Nv, vs:vs + Nv].set(params["wv2a"])
        w_node = w_node.at[as_:as_ + Na, as_:as_ + Na].set(params["wa2v"])

    # Per-column node-linear bias (folded into the mask in the wrapper) and the
    # active cross-modal same-batch block pattern.
    bias_row = jnp.concatenate([jnp.tile(params["bv2a"].reshape(-1), batch),
                                jnp.tile(params["ba2v"].reshape(-1), batch)])
    active = jnp.zeros((Ntot, Ntot), jnp.float32)
    for b in range(batch):
        vs, as_ = b * Nv, NvB + b * Na
        active = active.at[vs:vs + Nv, as_:as_ + Na].set(1.0)
        active = active.at[as_:as_ + Na, vs:vs + Nv].set(1.0)

    return {"w": w, "w_node": w_node, "bias_row": bias_row, "active": active}


# ----------------------------------------------------------------------------- wrapper
@jax.jit
def dual_cross_graph_attention(x, y, adj, packed):
    """x: (B, Nv, C)  y: (B, Na, C)  adj: (B, Nv, Na)  -> (out_x, out_y)."""
    B, Nv, C = x.shape
    Na = y.shape[1]
    NvB, NaB = B * Nv, B * Na
    Ntot = NvB + NaB
    assert 2 * C + 2 <= LANES and Ntot <= LANES

    xf = x.reshape(NvB, C).astype(jnp.float32)
    yf = y.reshape(NaB, C).astype(jnp.float32)

    # Packed projection input: [[X, 0], [0, Y]] + bias-indicator lanes 2C / 2C+1.
    zaug = jnp.zeros((Ntot, LANES), jnp.float32)
    zaug = zaug.at[:NvB, 0:C].set(xf)
    zaug = zaug.at[NvB:, C:2 * C].set(yf)
    zaug = zaug.at[:NvB, 2 * C].set(1.0)
    zaug = zaug.at[NvB:, 2 * C + 1].set(1.0)

    # Residual rows [X; Y] aligned to output lanes 0:C.
    resid = jnp.zeros((Ntot, LANES), jnp.float32)
    resid = resid.at[:NvB, 0:C].set(xf)
    resid = resid.at[NvB:, 0:C].set(yf)

    # Adjacency (and its transpose) expanded to the global node axis.
    adj_full = jnp.zeros((Ntot, Ntot), jnp.float32)
    for b in range(B):
        vs, as_ = b * Nv, NvB + b * Na
        adj_full = adj_full.at[vs:vs + Nv, as_:as_ + Na].set(adj[b])
        adj_full = adj_full.at[as_:as_ + Na, vs:vs + Nv].set(adj[b].T)

    # Combined mask: node-linear bias * adj + (NEG_BIG inside active blocks,
    # OFF_BLOCK outside), precomputed so the kernel does one mul + one add.
    mask_full = jnp.where(adj_full > 0.0, 0.0,
                          jnp.where(packed["active"] > 0.0, NEG_BIG, OFF_BLOCK))
    cm_full = packed["bias_row"][None, :] * adj_full + mask_full

    # Single f32 data slab (one DMA): sections padded to 8-row boundaries.
    sections = (zaug, resid, adj_full, cm_full, packed["w_node"])
    offs, rows, padded = [], 0, []
    for sec in sections:
        offs.append(rows)
        r, c = sec.shape
        pad = jnp.zeros((_round8(r), LANES), jnp.float32).at[:r, :c].set(sec)
        padded.append(pad)
        rows += pad.shape[0]
    data = jnp.concatenate(padded, axis=0)

    kernel = functools.partial(
        _dcga_kernel, n_tot=Ntot,
        off_z=offs[0], off_res=offs[1], off_adj=offs[2], off_cm=offs[3], off_wn=offs[4])

    vmem = pl.BlockSpec(memory_space=pltpu.MemorySpace.VMEM)
    # grid=() : one fused invocation (2 input DMAs + 1 lane-dense output DMA,
    # ~150 KiB resident -> far below the VMEM limit on every generation).
    # TODO(synk): on v7x (2 TensorCores) a 2-step "parallel" grid over the node
    # axis could use both cores, but at Ntot=48 the ~0.35us per-grid-step
    # overhead exceeds the per-core body; keep the single fused step.
    out = pl.pallas_call(
        kernel,
        in_specs=[vmem, vmem],
        out_specs=vmem,
        out_shape=jax.ShapeDtypeStruct((Ntot, LANES), jnp.float32),
    )(data, packed["w"])

    out_x = out[:NvB, :C].reshape(B, Nv, C)
    out_y = out[NvB:Ntot, :C].reshape(B, Na, C)
    return out_x, out_y


# ----------------------------------------------------------------------------- reference
def reference(x, y, adj, p):
    """Pure-JAX (f32) mirror of the PyTorch forward (for verification)."""
    lin = lambda a, w, b: a @ w + b
    pk1 = lin(lin(x, p["wk1"], p["bk1"]), p["wks"], p["bks"])
    pk2 = lin(lin(y, p["wk2"], p["bk2"]), p["wks"], p["bks"])
    energy = jnp.einsum("bnc,bmc->bnm", pk1, pk2)
    att1 = lin(energy, p["wa2v"], p["ba2v"])
    att2 = lin(jnp.swapaxes(energy, 1, 2), p["wv2a"], p["bv2a"])
    adj_re = jnp.where(adj > 0.0, 0.0, NEG_BIG)
    att1 = jax.nn.softmax(att1 * adj + adj_re, axis=-1)
    att2 = jax.nn.softmax(att2 * jnp.swapaxes(adj, 1, 2)
                          + jnp.swapaxes(adj_re, 1, 2), axis=-1)
    pv_y = lin(y, p["wv2"], p["bv2"])
    pv_x = lin(x, p["wv1"], p["bv1"])
    out_x = p["gamma1"] * jnp.einsum("bnm,bmc->bnc", att1, pv_y) + x
    out_y = p["gamma2"] * jnp.einsum("bmn,bnc->bmc", att2, pv_x) + y
    return out_x, out_y


def init_params(key, in_channels, vid_nodes, aud_nodes, ratio=4):
    C, Cr, Nv, Na = in_channels, in_channels // ratio, vid_nodes, aud_nodes
    keys = jax.random.split(key, 16)
    n = lambda k, shape, s=0.1: (jax.random.normal(k, shape, jnp.float32) * s)
    # Linear weights stored (in, out); biases stored (1, out).
    params = {
        "wk1": n(keys[0], (C, Cr)),  "bk1": n(keys[1], (1, Cr)),
        "wk2": n(keys[2], (C, Cr)),  "bk2": n(keys[3], (1, Cr)),
        "wks": n(keys[4], (Cr, Cr)), "bks": n(keys[5], (1, Cr)),
        "wa2v": n(keys[6], (Na, Na)), "ba2v": n(keys[7], (1, Na)),
        "wv2a": n(keys[8], (Nv, Nv)), "bv2a": n(keys[9], (1, Nv)),
        "wv1": n(keys[10], (C, C)),  "bv1": n(keys[11], (1, C)),
        "wv2": n(keys[12], (C, C)),  "bv2": n(keys[13], (1, C)),
        # PyTorch inits gamma1/gamma2 to 0; use non-zero values here so the
        # attention path is actually exercised.
        "gamma1": jnp.asarray(0.5, jnp.float32),
        "gamma2": jnp.asarray(-0.3, jnp.float32),
    }
    return params


if __name__ == "__main__":
    B, C, ratio = 2, 32, 4
    Nv, Na = 16, 8   # vid_nodes, aud_nodes

    key = jax.random.PRNGKey(0)
    kx, ky, kadj, kp = jax.random.split(key, 4)
    x = jax.random.normal(kx, (B, Nv, C), jnp.float32)
    y = jax.random.normal(ky, (B, Na, C), jnp.float32)
    adj = (jax.random.uniform(kadj, (B, Nv, Na)) > 0.3).astype(jnp.float32)

    params = init_params(kp, C, Nv, Na, ratio)
    packed = pack_params(params, B)          # one-time weight/bias/gamma packing

    out_x, out_y = dual_cross_graph_attention(x, y, adj, packed)
    out_x = jax.block_until_ready(out_x)
    out_y = jax.block_until_ready(out_y)

    ref_x, ref_y = reference(x, y, adj, params)
    assert not bool(jnp.any(jnp.isnan(out_x))) and not bool(jnp.any(jnp.isnan(out_y)))
    assert bool(jnp.allclose(out_x, ref_x, atol=3e-2, rtol=3e-2)), "out_x mismatch"
    assert bool(jnp.allclose(out_y, ref_y, atol=3e-2, rtol=3e-2)), "out_y mismatch"

    print("KERNEL_OK")
</pallas_src>

<mosaic_0001>
module attributes {stable_mosaic.version = 11 : i64} {
  func.func @_dcga_kernel(%arg0: memref<240x128xf32, #tpu.memory_space<vmem>>, %arg1: memref<3x128x128xbf16, #tpu.memory_space<vmem>>, %arg2: memref<48x128xf32, #tpu.memory_space<vmem>>) attributes {dimension_semantics = [], scalar_prefetch = 0 : i64, scratch_operands = 0 : i64, tpu.core_type = #tpu.core_type<tc>} {
    %c0 = arith.constant 0 : index
    %c0_0 = arith.constant 0 : index
    %0 = vector.load %arg0[%c0, %c0_0] : memref<240x128xf32, #tpu.memory_space<vmem>>, vector<48x128xf32>
    %1 = arith.truncf %0 : vector<48x128xf32> to vector<48x128xbf16>
    %c0_1 = arith.constant 0 : index
    %c0_2 = arith.constant 0 : index
    %c0_3 = arith.constant 0 : index
    %2 = vector.load %arg1[%c0_1, %c0_2, %c0_3] : memref<3x128x128xbf16, #tpu.memory_space<vmem>>, vector<1x128x128xbf16>
    %3 = vector.shape_cast %2 : vector<1x128x128xbf16> to vector<128x128xbf16>
    %c1 = arith.constant 1 : index
    %c0_4 = arith.constant 0 : index
    %c0_5 = arith.constant 0 : index
    %4 = vector.load %arg1[%c1, %c0_4, %c0_5] : memref<3x128x128xbf16, #tpu.memory_space<vmem>>, vector<1x128x128xbf16>
    %5 = vector.shape_cast %4 : vector<1x128x128xbf16> to vector<128x128xbf16>
    %c2 = arith.constant 2 : index
    %c0_6 = arith.constant 0 : index
    %c0_7 = arith.constant 0 : index
    %6 = vector.load %arg1[%c2, %c0_6, %c0_7] : memref<3x128x128xbf16, #tpu.memory_space<vmem>>, vector<1x128x128xbf16>
    %7 = vector.shape_cast %6 : vector<1x128x128xbf16> to vector<128x128xbf16>
    %cst = arith.constant dense<0.000000e+00> : vector<48x128xf32>
    %8 = tpu.matmul %1, %3, %cst {dimension_numbers = #tpu.dot_dimension_numbers<[1], [0], [0], [1], [0, 0, 1, 1], [], []>} : vector<48x128xbf16>, vector<128x128xbf16>, vector<48x128xf32> -> vector<48x128xf32>
    %9 = arith.truncf %8 : vector<48x128xf32> to vector<48x128xbf16>
    %cst_8 = arith.constant dense<0.000000e+00> : vector<48x128xf32>
    %10 = tpu.matmul %9, %5, %cst_8 {dimension_numbers = #tpu.dot_dimension_numbers<[1], [0], [0], [1], [0, 0, 1, 1], [], []>} : vector<48x128xbf16>, vector<128x128xbf16>, vector<48x128xf32> -> vector<48x128xf32>
    %cst_9 = arith.constant dense<0.000000e+00> : vector<48x128xf32>
    %11 = tpu.matmul %1, %7, %cst_9 {dimension_numbers = #tpu.dot_dimension_numbers<[1], [0], [0], [1], [0, 0, 1, 1], [], []>} : vector<48x128xbf16>, vector<128x128xbf16>, vector<48x128xf32> -> vector<48x128xf32>
    %12 = arith.truncf %10 : vector<48x128xf32> to vector<48x128xbf16>
    %cst_10 = arith.constant dense<0.000000e+00> : vector<48x48xf32>
    %13 = tpu.matmul %12, %12, %cst_10 {dimension_numbers = #tpu.dot_dimension_numbers<[1], [1], [0], [0], [0, 0, 1, 0], [], []>} : vector<48x128xbf16>, vector<48x128xbf16>, vector<48x48xf32> -> vector<48x48xf32>
    %c192 = arith.constant 192 : index
    %c0_11 = arith.constant 0 : index
    %14 = vector.load %arg0[%c192, %c0_11] : memref<240x128xf32, #tpu.memory_space<vmem>>, vector<48x48xf32>
    %15 = arith.truncf %14 : vector<48x48xf32> to vector<48x48xbf16>
    %16 = arith.truncf %13 : vector<48x48xf32> to vector<48x48xbf16>
    %cst_12 = arith.constant dense<0.000000e+00> : vector<48x48xf32>
    %17 = tpu.matmul %16, %15, %cst_12 {dimension_numbers = #tpu.dot_dimension_numbers<[1], [0], [0], [1], [0, 0, 1, 1], [], []>} : vector<48x48xbf16>, vector<48x48xbf16>, vector<48x48xf32> -> vector<48x48xf32>
    %c96 = arith.constant 96 : index
    %c0_13 = arith.constant 0 : index
    %18 = vector.load %arg0[%c96, %c0_13] : memref<240x128xf32, #tpu.memory_space<vmem>>, vector<48x48xf32>
    %c144 = arith.constant 144 : index
    %c0_14 = arith.constant 0 : index
    %19 = vector.load %arg0[%c144, %c0_14] : memref<240x128xf32, #tpu.memory_space<vmem>>, vector<48x48xf32>
    %20 = arith.mulf %17, %18 : vector<48x48xf32>
    %21 = arith.addf %20, %19 : vector<48x48xf32>
    %cst_15 = arith.constant dense<0xFF800000> : vector<48xf32>
    %22 = vector.multi_reduction <maximumf>, %21, %cst_15 [1] : vector<48x48xf32> to vector<48xf32>
    %23 = vector.shape_cast %22 : vector<48xf32> to vector<48x1xf32>
    %24 = vector.broadcast %23 : vector<48x1xf32> to vector<48x48xf32>
    %25 = arith.subf %21, %24 : vector<48x48xf32>
    %26 = math.exp %25 : vector<48x48xf32>
    %cst_16 = arith.constant dense<0.000000e+00> : vector<48xf32>
    %27 = vector.multi_reduction <add>, %26, %cst_16 [1] : vector<48x48xf32> to vector<48xf32>
    %28 = vector.shape_cast %27 : vector<48xf32> to vector<48x1xf32>
    %29 = tpu.reciprocal %28 {approx = true} : vector<48x1xf32> -> vector<48x1xf32>
    %30 = vector.broadcast %29 : vector<48x1xf32> to vector<48x48xf32>
    %31 = arith.mulf %26, %30 : vector<48x48xf32>
    %c48 = arith.constant 48 : index
    %c0_17 = arith.constant 0 : index
    %32 = vector.load %arg0[%c48, %c0_17] : memref<240x128xf32, #tpu.memory_space<vmem>>, vector<48x128xf32>
    %33 = arith.truncf %31 : vector<48x48xf32> to vector<48x48xbf16>
    %34 = arith.truncf %11 : vector<48x128xf32> to vector<48x128xbf16>
    %cst_18 = arith.constant dense<0.000000e+00> : vector<48x128xf32>
    %35 = tpu.matmul %33, %34, %cst_18 {dimension_numbers = #tpu.dot_dimension_numbers<[1], [0], [0], [1], [0, 0, 1, 1], [], []>} : vector<48x48xbf16>, vector<48x128xbf16>, vector<48x128xf32> -> vector<48x128xf32>
    %36 = arith.addf %35, %32 : vector<48x128xf32>
    %c0_19 = arith.constant 0 : index
    %c0_20 = arith.constant 0 : index
    %37 = vector.load %arg2[%c0_19, %c0_20] : memref<48x128xf32, #tpu.memory_space<vmem>>, vector<48x128xf32>
    tpu.vector_store %arg2[%c0_19, %c0_20], %36 {strides = array<i32>} : memref<48x128xf32, #tpu.memory_space<vmem>>, vector<48x128xf32>,
    return
  }
}

</mosaic_0001>

<bundles_post_ra>
// kernel: dual_cross_graph_attention.1
= control target key start
LH: loop header
LB: loop body
LE: loop exit
PB: predicated region body
PF: predicated region fallthrough
CT: control target
= control target key end

     0   :  { %v1007_v0 = vmov 0.0   ;;  %vm1008_vm0 = vmmov 0   ;;  %vm461_vm1 = vcmask 392192   ;;  %s1303_s1 = inlined_call_operand.vmem [shape: bf16[3,128,128], index: 1, kind: input, shape index: {}]   ;;  %s1304_s0 = inlined_call_operand.vmem [shape: f32[240,128], index: 0, kind: input, shape index: {}]   ;;  %s1305_s2 = inlined_call_operand.vmem [shape: f32[48,128], index: 2, kind: output, shape index: {}]  }
   0x1   :  { %819 = vmatprep.subr.bf16.mxu0 %v1007_v0  ;;  %v959_v1 = vld [vmem:[%s1303_s1] sm:$0xff]   ;;  %835 = vmatprep.mubr.msk.bf16.mxu0 %vm1008_vm0, %v1007_v0  ;;  %v960_v2 = vld [vmem:[%s1303_s1 + $0x8] sm:$0xff]   ;;  %v961_v3 = vld [vmem:[%s1303_s1 + $0x10] sm:$0xff]  }
   0x2   :  { %847 = vmatprep.subr.bf16.mxu1 %v1007_v0  ;;  %863 = vmatprep.mubr.msk.bf16.mxu1 %vm1008_vm0, %v1007_v0  ;;  %v962_v4 = vld [vmem:[%s1303_s1 + $0x18] sm:$0xff]   ;;  %v967_v5 = vld [vmem:[%s1303_s1 + $0x40] sm:$0xff]   ;;  %v968_v6 = vld [vmem:[%s1303_s1 + $0x48] sm:$0xff]  }
   0x3   :  { %820 = vmatpush3.bf16.msra.mxu0 %v959_v1  ;;  %848 = vmatpush3.bf16.msra.mxu1 %v967_v5  ;;  %v963_v7 = vld [vmem:[%s1303_s1 + $0x20] sm:$0xff]   ;;  %v964_v8 = vld [vmem:[%s1303_s1 + $0x28] sm:$0xff]   ;;  %v969_v9 = vld [vmem:[%s1303_s1 + $0x50] sm:$0xff]  }
   0x4   :  { %821 = vmatprep.subr.bf16.mxu0 %v1007_v0  ;;  %849 = vmatprep.subr.bf16.mxu1 %v1007_v0  ;;  %v970_v10 = vld [vmem:[%s1303_s1 + $0x58] sm:$0xff]   ;;  %v965_v11 = vld [vmem:[%s1303_s1 + $0x30] sm:$0xff]   ;;  %v971_v12 = vld [vmem:[%s1303_s1 + $0x60] sm:$0xff]  }
   0x5   :  { %v966_v13 = vld [vmem:[%s1303_s1 + $0x38] sm:$0xff]   ;;  %v12_v14 = vld [vmem:[%s1304_s0] sm:$0xff]  ;;  %v13_v15 = vld [vmem:[%s1304_s0 + $0x8] sm:$0xff] }
   0x6   :  { %v972_v16 = vld [vmem:[%s1303_s1 + $0x68] sm:$0xff]   ;;  %v1089_v17 = vpack.c.bf16 %v13_v15, %v12_v14  ;;  %v973_v18 = vld [vmem:[%s1303_s1 + $0x70] sm:$0xff]   ;;  %v15_v20 = vld [vmem:[%s1304_s0 + $0x18] sm:$0xff] }
   0x7   :  { %822 = vmatpush3.bf16.msra.mxu0 %v960_v2  ;;  %850 = vmatpush3.bf16.msra.mxu1 %v968_v6  ;;  %v14_v19 = vld [vmem:[%s1304_s0 + $0x10] sm:$0xff]  ;;  %v16_v22 = vld [vmem:[%s1304_s0 + $0x20] sm:$0xff]  ;;  %v17_v23 = vld [vmem:[%s1304_s0 + $0x28] sm:$0xff] }
   0x8   :  { %823 = vmatprep.subr.bf16.mxu0 %v1007_v0  ;;  %851 = vmatprep.subr.bf16.mxu1 %v1007_v0  ;;  %v1106_v21 = vpack.c.bf16 %v15_v20, %v14_v19  ;;  %v1118_v24 = vpack.c.bf16 %v17_v23, %v16_v22  ;;  %v974_v25 = vld [vmem:[%s1303_s1 + $0x78] sm:$0xff]   ;;  %v449_v56 = vld [vmem:[%s1304_s0 + $0xc0] sm:$0xff]  ;;  %v450_v57 = vld [vmem:[%s1304_s0 + $0xc8] sm:$0xff] }
   0x9   :  { %v455_v58 = vpack.c.bf16 %v450_v57, %v449_v56  ;;  %v451_v59 = vld [vmem:[%s1304_s0 + $0xd0] sm:$0xff]  ;;  %v452_v60 = vld [vmem:[%s1304_s0 + $0xd8] sm:$0xff]  ;;  %v453_v62 = vld [vmem:[%s1304_s0 + $0xe0] sm:$0xff] }
   0xa   :  { %v456_v61 = vpack.c.bf16 %v452_v60, %v451_v59  ;;  %v454_v63 = vld [vmem:[%s1304_s0 + $0xe8] sm:$0xff]  ;;  %v977_v20 = vld [vmem:[%s1303_s1 + $0x90] sm:$0xff]   ;;  %v978_v22 = vld [vmem:[%s1303_s1 + $0x98] sm:$0xff]  }
   0xb   :  { %824 = vmatpush3.bf16.msra.mxu0 %v961_v3  ;;  %852 = vmatpush3.bf16.msra.mxu1 %v969_v9  ;;  %v457_v1 = vpack.c.bf16 %v454_v63, %v453_v62  ;;  %v976_v19 = vld [vmem:[%s1303_s1 + $0x88] sm:$0xff]   ;;  %v979_v23 = vld [vmem:[%s1303_s1 + $0xa0] sm:$0xff]   ;;  %v539_v60 = vld [vmem:[%s1304_s0 + $0xb8] sm:$0xff] }
   0xc   :  { %825 = vmatprep.subr.bf16.mxu0 %v1007_v0  ;;  %853 = vmatprep.subr.bf16.mxu1 %v1007_v0 }
   0xf   :  { %826 = vmatpush3.bf16.msra.mxu0 %v962_v4  ;;  %854 = vmatpush3.bf16.msra.mxu1 %v970_v10 }
  0x10   :  { %827 = vmatprep.subr.bf16.mxu0 %v1007_v0  ;;  %855 = vmatprep.subr.bf16.mxu1 %v1007_v0 }
  0x13   :  { %828 = vmatpush3.bf16.msra.mxu0 %v963_v7  ;;  %856 = vmatpush3.bf16.msra.mxu1 %v971_v12 }
  0x14   :  { %829 = vmatprep.subr.bf16.mxu0 %v1007_v0  ;;  %857 = vmatprep.subr.bf16.mxu1 %v1007_v0 }
  0x17   :  { %830 = vmatpush3.bf16.msra.mxu0 %v964_v8  ;;  %858 = vmatpush3.bf16.msra.mxu1 %v972_v16 }
  0x18   :  { %831 = vmatprep.subr.bf16.mxu0 %v1007_v0  ;;  %859 = vmatprep.subr.bf16.mxu1 %v1007_v0 }
  0x1b   :  { %832 = vmatpush3.bf16.msra.mxu0 %v965_v11  ;;  %860 = vmatpush3.bf16.msra.mxu1 %v973_v18  ;;  %v975_v18 = vld [vmem:[%s1303_s1 + $0x80] sm:$0xff]  }
  0x1c   :  { %833 = vmatprep.subr.bf16.mxu0 %v1007_v0  ;;  %861 = vmatprep.subr.bf16.mxu1 %v1007_v0 }
  0x1f   :  { %834 = vmatpush3.bf16.msra.mxu0 %v966_v13  ;;  %862 = vmatpush3.bf16.msra.mxu1 %v974_v25  ;;  %v980_v25 = vld [vmem:[%s1303_s1 + $0xa8] sm:$0xff]  }
  0x20   :  { %875 = vmatprep.subr.bf16.mxu0 %v1007_v0  ;;  %903 = vmatprep.subr.bf16.mxu1 %v1007_v0 }
  0x22   :  { %836 = vmatmul.mubr.bf16.vlgmr.msra.gmra.mrb[0].mxu0 %v1089_v17 }
  0x23   :  { %839 = vmatprep.mubr.msk.bf16.mxu0 %vm1008_vm0, %v1007_v0  ;;  %876 = vmatpush3.bf16.msra.mxu0 %v975_v18 }
  0x24   :  { %877 = vmatprep.subr.bf16.mxu0 %v1007_v0 }
  0x27   :  { %878 = vmatpush3.bf16.msra.mxu0 %v976_v19 }
  0x28   :  { %879 = vmatprep.subr.bf16.mxu0 %v1007_v0 }
  0x2a   :  { %840 = vmatmul.mubr.bf16.gmra.mrb[4].mxu0 %v1106_v21 }
  0x2b   :  { %843 = vmatprep.mubr.msk.bf16.mxu0 %vm1008_vm0, %v1007_v0  ;;  %880 = vmatpush3.bf16.msra.mxu0 %v977_v20 }
  0x2c   :  { %881 = vmatprep.subr.bf16.mxu0 %v1007_v0 }
  0x2f   :  { %882 = vmatpush3.bf16.msra.mxu0 %v978_v22 }
  0x30   :  { %883 = vmatprep.subr.bf16.mxu0 %v1007_v0 }
  0x32   :  { %844 = vmatmul.mubr.bf16.gmra.mrb[8].mxu0 %v1118_v24 }
  0x33   :  { %891 = vmatprep.mubr.msk.bf16.mxu0 %vm1008_vm0, %v1007_v0  ;;  %884 = vmatpush3.bf16.msra.mxu0 %v979_v23 }
  0x34   :  { %885 = vmatprep.subr.bf16.mxu0 %v1007_v0 }
  0x37   :  { %886 = vmatpush3.bf16.msra.mxu0 %v980_v25 }
  0x38   :  { %887 = vmatprep.subr.bf16.mxu0 %v1007_v0 }
  0xf5   :  { %v153_v26 = vpop.f32.mrb[0].mxu0 }
  0xf6   :  { %v837_v27 = vpop.f32.mrb[1].mxu0 }
  0xf7   :  { %v156_v28 = vpop.f32.mrb[2].mxu0  ;;  %v982_v27 = vld [vmem:[%s1303_s1 + $0xb8] sm:$0xff]  }
  0xf8   :  { %v176_v29 = vpack.c.bf16 %v156_v28, %v153_v26  ;;  %v838_v30 = vpop.f32.mrb[3].mxu0  ;;  %v981_v26 = vld [vmem:[%s1303_s1 + $0xb0] sm:$0xff]   ;;  %v528_v28 = vld [vmem:[%s1304_s0 + $0x60] sm:$0xff] }
  0xf9   :  { %888 = vmatpush3.bf16.msra.mxu0 %v981_v26 }
  0xfa   :  { %864 = vmatmul.mubr.bf16.vlgmr.msra.gmra.mrb[0].mxu1 %v176_v29  ;;  %889 = vmatprep.subr.bf16.mxu0 %v1007_v0 }
  0xfb   :  { %867 = vmatprep.mubr.msk.bf16.mxu1 %vm1008_vm0, %v1007_v0 }
  0xfd   :  { %v161_v31 = vpop.f32.mrb[4].mxu0  ;;  %890 = vmatpush3.bf16.msra.mxu0 %v982_v27 }
  0xfe   :  { %v841_v32 = vpop.f32.mrb[5].mxu0  ;;  %939 = vmatprep.subr.bf16.mxu0 %v1007_v0 }
  0xff   :  { %v164_v33 = vpop.f32.mrb[6].mxu0 }
 0x100   :  { %v177_v34 = vpack.c.bf16 %v164_v33, %v161_v31  ;;  %v842_v35 = vpop.f32.mrb[7].mxu0  ;;  %892 = vmatmul.mubr.bf16.vlgmr.msra.gmra.mrb[12].mxu0 %v1089_v17  ;;  %v529_v17 = vld [vmem:[%s1304_s0 + $0x68] sm:$0xff] }
 0x101   :  { %895 = vmatprep.mubr.msk.bf16.mxu0 %vm1008_vm0, %v1007_v0 }
 0x102   :  { %868 = vmatmul.mubr.bf16.gmra.mrb[4].mxu1 %v177_v34 }
 0x103   :  { %871 = vmatprep.mubr.msk.bf16.mxu1 %vm1008_vm0, %v1007_v0 }
 0x105   :  { %v169_v36 = vpop.f32.mrb[8].mxu0 }
 0x106   :  { %v845_v37 = vpop.f32.mrb[9].mxu0 }
 0x107   :  { %v172_v38 = vpop.f32.mrb[10].mxu0 }
 0x108   :  { %v178_v39 = vpack.c.bf16 %v172_v38, %v169_v36  ;;  %v846_v40 = vpop.f32.mrb[11].mxu0  ;;  %896 = vmatmul.mubr.bf16.gmra.mrb[16].mxu0 %v1106_v21  ;;  %v534_v21 = vld [vmem:[%s1304_s0 + $0x90] sm:$0xff] }
 0x109   :  { %899 = vmatprep.mubr.msk.bf16.mxu0 %vm1008_vm0, %v1007_v0  ;;  %v530_v38 = vld [vmem:[%s1304_s0 + $0x70] sm:$0xff]  ;;  %v531_v40 = vld [vmem:[%s1304_s0 + $0x78] sm:$0xff] }
 0x10a   :  { %872 = vmatmul.mubr.bf16.gmra.mrb[8].mxu1 %v178_v39 }
 0x10b   :  { %909 = vmatprep.mubr.msk.bf16.mxu1 %vm1008_vm0, %v1007_v0 }
 0x110   :  { %900 = vmatmul.mubr.bf16.gmra.mrb[20].mxu0 %v1118_v24  ;;  %v535_v24 = vld [vmem:[%s1304_s0 + $0x98] sm:$0xff] }
 0x111   :  { %945 = vmatprep.mubr.msk.bf16.mxu0 %vm1008_vm0, %v1007_v0 }
 0x1cd   :  { %v261_v41 = vpop.f32.mrb[0].mxu1 }
 0x1ce   :  { %v865_v42 = vpop.f32.mrb[1].mxu1 }
 0x1cf   :  { %v264_v43 = vpop.f32.mrb[2].mxu1 }
 0x1d0   :  { %v389_v44 = vpack.c.bf16 %v264_v43, %v261_v41  ;;  %v866_v45 = vpop.f32.mrb[3].mxu1  ;;  %v536_v41 = vld [vmem:[%s1304_s0 + $0xa0] sm:$0xff] }
 0x1d2   :  { %904 = vmatpush3.bf16.xpose.msra.mxu1 %v389_v44 }
 0x1d3   :  { %905 = vmatprep.subr.bf16.mxu1 %v1007_v0 }
 0x1d5   :  { %v269_v46 = vpop.f32.mrb[4].mxu1 }
 0x1d6   :  { %v869_v47 = vpop.f32.mrb[5].mxu1 }
 0x1d7   :  { %v272_v48 = vpop.f32.mrb[6].mxu1 }
 0x1d8   :  { %v390_v49 = vpack.c.bf16 %v272_v48, %v269_v46  ;;  %v870_v50 = vpop.f32.mrb[7].mxu1  ;;  %v537_v46 = vld [vmem:[%s1304_s0 + $0xa8] sm:$0xff] }
 0x1da   :  { %906 = vmatpush3.bf16.xpose.msra.mxu1 %v390_v49 }
 0x1db   :  { %907 = vmatprep.subr.bf16.mxu1 %v1007_v0 }
 0x1dd   :  { %v277_v51 = vpop.f32.mrb[8].mxu1 }
 0x1de   :  { %v873_v52 = vpop.f32.mrb[9].mxu1 }
 0x1df   :  { %v280_v53 = vpop.f32.mrb[10].mxu1  ;;  %v532_v52 = vld [vmem:[%s1304_s0 + $0x80] sm:$0xff] }
 0x1e0   :  { %v391_v54 = vpack.c.bf16 %v280_v53, %v277_v51  ;;  %v874_v55 = vpop.f32.mrb[11].mxu1 }
 0x1e1   :  { %v538_v55 = vld [vmem:[%s1304_s0 + $0xb0] sm:$0xff] }
 0x1e2   :  { %908 = vmatpush3.bf16.xpose.msra.mxu1 %v391_v54 }
 0x1e3   :  { %921 = vmatprep.subr.bf16.mxu1 %v1007_v0 }
 0x1e9   :  { %910 = vmatmul.mubr.bf16.vlgmr.msra.gmra.mrb[12].mxu1 %v389_v44 }
 0x1ea   :  { %913 = vmatprep.mubr.msk.bf16.mxu1 %vm1008_vm0, %v1007_v0  ;;  %922 = vmatpush3.bf16.msra.mxu1 %v455_v58 }
 0x1eb   :  { %923 = vmatprep.subr.bf16.mxu1 %v1007_v0 }
 0x1ee   :  { %924 = vmatpush3.bf16.msra.mxu1 %v456_v61 }
 0x1ef   :  { %925 = vmatprep.subr.bf16.mxu1 %v1007_v0 }
 0x1f1   :  { %914 = vmatmul.mubr.bf16.gmra.mrb[16].mxu1 %v390_v49 }
 0x1f2   :  { %917 = vmatprep.mubr.msk.bf16.mxu1 %vm1008_vm0, %v1007_v0  ;;  %926 = vmatpush3.bf16.msra.mxu1 %v457_v1 }
 0x1f9   :  { %918 = vmatmul.mubr.bf16.gmra.mrb[20].mxu1 %v391_v54  ;;  %v533_v54 = vld [vmem:[%s1304_s0 + $0x88] sm:$0xff] }
 0x1fa   :  { %927 = vmatprep.mubr.msk.bf16.mxu1 %vm1008_vm0, %v1007_v0 }
 0x2bc   :  { %v426_v2 = vpop.f32.mrb[12].mxu1 }
 0x2bd   :  { %v911_v3 = vpop.f32.mrb[13].mxu1 }
 0x2be   :  { %v429_v4 = vpop.f32.mrb[14].mxu1 }
 0x2bf   :  { %v458_v5 = vpack.c.bf16 %v429_v4, %v426_v2  ;;  %v912_v6 = vpop.f32.mrb[15].mxu1  ;;  %v366_v4 = vpop.f32.mrb[12].mxu0 }
 0x2c1   :  { %928 = vmatmul.mubr.msk.bf16.vlgmr.msra.gmra.mrb[24].mxu1 %vm461_vm1, %v458_v5  ;;  %v893_v5 = vpop.f32.mrb[13].mxu0 }
 0x2c2   :  { %931 = vmatprep.mubr.msk.bf16.mxu1 %vm1008_vm0, %v1007_v0  ;;  %v369_v6 = vpop.f32.mrb[14].mxu0 }
 0x2c4   :  { %v434_v7 = vpop.f32.mrb[16].mxu1 }
 0x2c5   :  { %v915_v8 = vpop.f32.mrb[17].mxu1 }
 0x2c6   :  { %v437_v9 = vpop.f32.mrb[18].mxu1  ;;  %v894_v8 = vpop.f32.mrb[15].mxu0 }
 0x2c7   :  { %v459_v10 = vpack.c.bf16 %v437_v9, %v434_v7  ;;  %v916_v11 = vpop.f32.mrb[19].mxu1  ;;  %v627_v7 = vpack.c.bf16 %v369_v6, %v366_v4 }
 0x2c8   :  { %v374_v11 = vpop.f32.mrb[16].mxu0 }
 0x2c9   :  { %932 = vmatmul.mubr.msk.bf16.gmra.mrb[28].mxu1 %vm461_vm1, %v459_v10  ;;  %940 = vmatpush3.bf16.msra.mxu0 %v627_v7  ;;  %v618_v7 = vld [vmem:[%s1304_s0 + $0x30] sm:$0xff] }
 0x2ca   :  { %935 = vmatprep.mubr.msk.bf16.mxu1 %vm1008_vm0, %v1007_v0  ;;  %941 = vmatprep.subr.bf16.mxu0 %v1007_v0 }
 0x2cc   :  { %v442_v12 = vpop.f32.mrb[20].mxu1 }
 0x2cd   :  { %v919_v13 = vpop.f32.mrb[21].mxu1 }
 0x2ce   :  { %v445_v14 = vpop.f32.mrb[22].mxu1 }
 0x2cf   :  { %v460_v15 = vpack.c.bf16 %v445_v14, %v442_v12  ;;  %v920_v16 = vpop.f32.mrb[23].mxu1  ;;  %v897_v12 = vpop.f32.mrb[17].mxu0 }
 0x2d0   :  { %v377_v14 = vpop.f32.mrb[18].mxu0 }
 0x2d1   :  { %936 = vmatmul.mubr.msk.bf16.gmra.mrb[32].mxu1 %vm461_vm1, %v460_v15  ;;  %v628_v16 = vpack.c.bf16 %v377_v14, %v374_v11  ;;  %v898_v18 = vpop.f32.mrb[19].mxu0  ;;  %v620_v14 = vld [vmem:[%s1304_s0 + $0x40] sm:$0xff] }
 0x2d3   :  { %942 = vmatpush3.bf16.msra.mxu0 %v628_v16  ;;  %v621_v16 = vld [vmem:[%s1304_s0 + $0x48] sm:$0xff] }
 0x2d4   :  { %943 = vmatprep.subr.bf16.mxu0 %v1007_v0 }
 0x394   :  { %v505_v29 = vpop.f32.mrb[24].mxu1 }
 0x395   :  { %v540_v30 = vmul.f32 %v528_v28, %v505_v29  ;;  %v929_v31 = vpop.f32.mrb[25].mxu1 }
 0x396   :  { %v508_v32 = vpop.f32.mrb[26].mxu1 }
 0x397   :  { %v541_v33 = vmul.f32 %v529_v17, %v508_v32  ;;  %v930_v34 = vpop.f32.mrb[27].mxu1  ;;  %v546_v35 = vadd.f32 %v540_v30, %v534_v21 }
 0x399   :  { %v552_v36 = vsel %vm461_vm1, %v546_v35, -inf  ;;  %v547_v37 = vadd.f32 %v541_v33, %v535_v24 }
 0x39a   :  { %553 = vmax.xlane.f32.xlu0 %v552_v36 }
 0x39b   :  { %v555_v44 = vsel %vm461_vm1, %v547_v37, -inf }
 0x39c   :  { %v513_v39 = vpop.f32.mrb[28].mxu1 }
 0x39d   :  { %v542_v42 = vmul.f32 %v530_v38, %v513_v39  ;;  %v933_v43 = vpop.f32.mrb[29].mxu1 }
 0x39e   :  { %556 = vmax.xlane.f32.xlu0 %v555_v44  ;;  %v516_v45 = vpop.f32.mrb[30].mxu1  ;;  %v382_v44 = vpop.f32.mrb[20].mxu0 }
 0x39f   :  { %v543_v47 = vmul.f32 %v531_v40, %v516_v45  ;;  %v934_v48 = vpop.f32.mrb[31].mxu1  ;;  %v548_v49 = vadd.f32 %v542_v42, %v536_v41  ;;  %v901_v45 = vpop.f32.mrb[21].mxu0 }
 0x3a1   :  { %v558_v50 = vsel %vm461_vm1, %v548_v49, -inf  ;;  %v549_v51 = vadd.f32 %v543_v47, %v537_v46  ;;  %v385_v46 = vpop.f32.mrb[22].mxu0 }
 0x3a2   :  { %559 = vmax.xlane.f32.xlu1 %v558_v50  ;;  %v902_v47 = vpop.f32.mrb[23].mxu0  ;;  %v629_v48 = vpack.c.bf16 %v385_v46, %v382_v44 }
 0x3a3   :  { %v561_v58 = vsel %vm461_vm1, %v549_v51, -inf }
 0x3a4   :  { %v521_v53 = vpop.f32.mrb[32].mxu1  ;;  %944 = vmatpush3.bf16.msra.mxu0 %v629_v48 }
 0x3a5   :  { %v544_v56 = vmul.f32 %v532_v52, %v521_v53  ;;  %v937_v57 = vpop.f32.mrb[33].mxu1 }
 0x3a6   :  { %562 = vmax.xlane.f32.xlu1 %v561_v58  ;;  %v524_v59 = vpop.f32.mrb[34].mxu1 }
 0x3a7   :  { %v545_v61 = vmul.f32 %v533_v54, %v524_v59  ;;  %v938_v62 = vpop.f32.mrb[35].mxu1  ;;  %v550_v63 = vadd.f32 %v544_v56, %v538_v55 }
 0x3a9   :  { %v564_v1 = vsel %vm461_vm1, %v550_v63, -inf  ;;  %v551_v2 = vadd.f32 %v545_v61, %v539_v60 }
 0x3aa   :  { %565 = vmax.xlane.f32.xlu0 %v564_v1 }
 0x3ab   :  { %v567_v3 = vsel %vm461_vm1, %v551_v2, -inf }
 0x3ac   :  { %568 = vmax.xlane.f32.xlu1 %v567_v3 }
 0x427   :  { %v554_v9 = vpop.xlane.xlu0 %553 }
 0x428   :  { %v570_v10 = vsub.f32 %v546_v35, %v554_v9  ;;  %v619_v9 = vld [vmem:[%s1304_s0 + $0x38] sm:$0xff] }
 0x42a   :  { %v576_v13 = vmul.f32 1.442695, %v570_v10 }
 0x42b   :  { %v557_v15 = vpop.xlane.xlu0 %556 }
 0x42c   :  { %983 = vpow2.f32 %v576_v13  ;;  %v571_v19 = vsub.f32 %v547_v37, %v557_v15 }
 0x42e   :  { %v578_v20 = vmul.f32 1.442695, %v571_v19 }
 0x42f   :  { %v560_v22 = vpop.xlane.xlu1 %559 }
 0x430   :  { %985 = vpow2.f32 %v578_v20  ;;  %v572_v23 = vsub.f32 %v548_v49, %v560_v22 }
 0x432   :  { %v580_v25 = vmul.f32 1.442695, %v572_v23 }
 0x433   :  { %v563_v26 = vpop.xlane.xlu1 %562 }
 0x434   :  { %987 = vpow2.f32 %v580_v25  ;;  %v573_v27 = vsub.f32 %v549_v51, %v563_v26  ;;  %v622_v25 = vld [vmem:[%s1304_s0 + $0x50] sm:$0xff] }
 0x436   :  { %v984_v28 = vpop.eup %983  ;;  %v582_v29 = vmul.f32 1.442695, %v573_v27  ;;  %v623_v27 = vld [vmem:[%s1304_s0 + $0x58] sm:$0xff] }
 0x437   :  { %v566_v17 = vpop.xlane.xlu0 %565  ;;  %v588_v21 = vsel %vm461_vm1, %v984_v28, 0.0 }
 0x438   :  { %989 = vpow2.f32 %v582_v29  ;;  %v574_v30 = vsub.f32 %v550_v63, %v566_v17  ;;  %589 = vadd.xlane.f32.xlu0 %v588_v21 }
 0x439   :  { %v569_v31 = vpop.xlane.xlu1 %568 }
 0x43a   :  { %v986_v32 = vpop.eup %985  ;;  %v584_v24 = vmul.f32 1.442695, %v574_v30  ;;  %v575_v33 = vsub.f32 %v551_v2, %v569_v31 }
 0x43b   :  { %v591_v34 = vsel %vm461_vm1, %v986_v32, 0.0 }
 0x43c   :  { %991 = vpow2.f32 %v584_v24  ;;  %v586_v35 = vmul.f32 1.442695, %v575_v33  ;;  %592 = vadd.xlane.f32.xlu1 %v591_v34 }
 0x43e   :  { %v988_v36 = vpop.eup %987  ;;  %993 = vpow2.f32 %v586_v35 }
 0x43f   :  { %v594_v37 = vsel %vm461_vm1, %v988_v36, 0.0 }
 0x440   :  { %595 = vadd.xlane.f32.xlu0 %v594_v37 }
 0x442   :  { %v990_v38 = vpop.eup %989 }
 0x443   :  { %v597_v39 = vsel %vm461_vm1, %v990_v38, 0.0 }
 0x444   :  { %598 = vadd.xlane.f32.xlu1 %v597_v39 }
 0x446   :  { %v992_v40 = vpop.eup %991 }
 0x447   :  { %v600_v41 = vsel %vm461_vm1, %v992_v40, 0.0 }
 0x448   :  { %v994_v42 = vpop.eup %993  ;;  %601 = vadd.xlane.f32.xlu0 %v600_v41 }
 0x449   :  { %v603_v43 = vsel %vm461_vm1, %v994_v42, 0.0 }
 0x44a   :  { %604 = vadd.xlane.f32.xlu1 %v603_v43 }
 0x4c5   :  { %v590_v49 = vpop.xlane.xlu0 %589 }
 0x4c6   :  { %995 = vrcp.f32 %v590_v49 }
 0x4c9   :  { %v593_v50 = vpop.xlane.xlu1 %592 }
 0x4ca   :  { %997 = vrcp.f32 %v593_v50 }
 0x4cd   :  { %v596_v51 = vpop.xlane.xlu0 %595 }
 0x4ce   :  { %999 = vrcp.f32 %v596_v51 }
 0x4d0   :  { %v996_v53 = vpop.eup %995 }
 0x4d1   :  { %v599_v52 = vpop.xlane.xlu1 %598  ;;  %v612_v55 = vmul.f32 %v996_v53, %v984_v28 }
 0x4d2   :  { %1001 = vrcp.f32 %v599_v52 }
 0x4d4   :  { %v998_v54 = vpop.eup %997 }
 0x4d5   :  { %v613_v56 = vmul.f32 %v998_v54, %v986_v32  ;;  %v602_v57 = vpop.xlane.xlu0 %601 }
 0x4d6   :  { %1003 = vrcp.f32 %v602_v57 }
 0x4d7   :  { %v624_v58 = vpack.c.bf16 %v613_v56, %v612_v55  ;;  %v605_v59 = vpop.xlane.xlu1 %604 }
 0x4d8   :  { %1005 = vrcp.f32 %v605_v59  ;;  %v1000_v60 = vpop.eup %999 }
 0x4d9   :  { %946 = vmatmul.mubr.msk.bf16.vlgmr.msra.gmra.mrb[24].mxu0 %vm461_vm1, %v624_v58  ;;  %v614_v62 = vmul.f32 %v1000_v60, %v988_v36 }
 0x4da   :  { %949 = vmatprep.mubr.msk.bf16.mxu0 %vm1008_vm0, %v1007_v0 }
 0x4dc   :  { %v1002_v61 = vpop.eup %1001 }
 0x4dd   :  { %v615_v63 = vmul.f32 %v1002_v61, %v990_v38 }
 0x4df   :  { %v625_v1 = vpack.c.bf16 %v615_v63, %v614_v62 }
 0x4e0   :  { %v1004_v2 = vpop.eup %1003 }
 0x4e1   :  { %950 = vmatmul.mubr.msk.bf16.gmra.mrb[28].mxu0 %vm461_vm1, %v625_v1  ;;  %v616_v5 = vmul.f32 %v1004_v2, %v992_v40 }
 0x4e2   :  { %v1006_v3 = vpop.eup %1005  ;;  %953 = vmatprep.mubr.msk.bf16.mxu0 %vm1008_vm0, %v1007_v0 }
 0x4e3   :  { %v617_v4 = vmul.f32 %v1006_v3, %v994_v42 }
 0x4e5   :  { %v626_v6 = vpack.c.bf16 %v617_v4, %v616_v5 }
 0x4e9   :  { %954 = vmatmul.mubr.msk.bf16.gmra.mrb[32].mxu0 %vm461_vm1, %v626_v6 }
 0x5ac   :  { %v673_v8 = vpop.f32.mrb[24].mxu0 }
 0x5ad   :  { %v674_v10 = vadd.f32 %v673_v8, %v618_v7  ;;  %v947_v11 = vpop.f32.mrb[25].mxu0 }
 0x5ae   :  { %v676_v12 = vpop.f32.mrb[26].mxu0 }
 0x5af   :  { %696 = vst [vmem:[%s1305_s2] sm:$0xff] %v674_v10  ;;  %v677_v0 = vadd.f32 %v676_v12, %v619_v9  ;;  %v948_v13 = vpop.f32.mrb[27].mxu0 }
 0x5b1   :  { %697 = vst [vmem:[%s1305_s2 + $0x8] sm:$0xff] %v677_v0 }
 0x5b4   :  { %v681_v15 = vpop.f32.mrb[28].mxu0 }
 0x5b5   :  { %v682_v18 = vadd.f32 %v681_v15, %v620_v14  ;;  %v951_v19 = vpop.f32.mrb[29].mxu0 }
 0x5b6   :  { %v684_v20 = vpop.f32.mrb[30].mxu0 }
 0x5b7   :  { %698 = vst [vmem:[%s1305_s2 + $0x10] sm:$0xff] %v682_v18  ;;  %v685_v22 = vadd.f32 %v684_v20, %v621_v16  ;;  %v952_v23 = vpop.f32.mrb[31].mxu0 }
 0x5b9   :  { %699 = vst [vmem:[%s1305_s2 + $0x18] sm:$0xff] %v685_v22 }
 0x5bc   :  { %v689_v26 = vpop.f32.mrb[32].mxu0 }
 0x5bd   :  { %v690_v28 = vadd.f32 %v689_v26, %v622_v25  ;;  %v955_v29 = vpop.f32.mrb[33].mxu0 }
 0x5be   :  { %v692_v17 = vpop.f32.mrb[34].mxu0 }
 0x5bf   :  { %700 = vst [vmem:[%s1305_s2 + $0x20] sm:$0xff] %v690_v28  ;;  %v693_v21 = vadd.f32 %v692_v17, %v623_v27  ;;  %v956_v30 = vpop.f32.mrb[35].mxu0 }
 0x5c1   :  { %701 = vst [vmem:[%s1305_s2 + $0x28] sm:$0xff] %v693_v21 }

</bundles_post_ra>
